<compile_context>
chip_gen: v6e
topology: v6e:2x2x1
jax: 0.10.0
libtpu: 0.0.40
codegen_flags: <defaults>
</compile_context>

<pallas_src>
from functools import partial

import jax
import jax.numpy as jnp
from jax.experimental import pallas as pl
from jax.experimental.pallas import tpu as pltpu

LANE = 128
SUBLANE = 8
MIN_SPLIT = 64   # smallest per-TC batch slab worth splitting for on v7x


def _round_up(n, m):
    return ((n + m - 1) // m) * m


def mlp_kernel(x_ref, w1_ref, b1_ref, w2_ref, b2_ref, o_ref):
    # Layer 1: bf16 operands, f32 accumulation on the MXU.
    h = jnp.dot(x_ref[...], w1_ref[...], preferred_element_type=jnp.float32)
    h = h + b1_ref[...]                       # (1, Hp) broadcasts over batch tile
    # Sigmoid via tanh: single EUP push, numerically robust for very negative h.
    h = 0.5 * (1.0 + jnp.tanh(0.5 * h))
    # Layer 2: bf16 operands, f32 accumulation.
    out = jnp.dot(h.astype(jnp.bfloat16), w2_ref[...],
                  preferred_element_type=jnp.float32)
    o_ref[...] = (out + b2_ref[...]).astype(o_ref.dtype)


def prepare_params(w1, b1, w2, b2):
    """One-time prep: pad feature dims to multiples of 128, cast weights to bf16.

    w1: (I, H), b1: (H,), w2: (H, O), b2: (O,) -- weights stored [in, out]
    (transpose of PyTorch's [out, in]) so the kernel computes x @ W directly.
    Padding is exact: padded contraction rows/cols are zero, and the
    sigmoid(0)=0.5 rows in the padded hidden dim hit zero rows of W2.
    """
    I, H = w1.shape
    O = w2.shape[1]
    Ip, Hp, Op = _round_up(I, LANE), _round_up(H, LANE), _round_up(O, LANE)

    w1p = jnp.pad(w1, ((0, Ip - I), (0, Hp - H))).astype(jnp.bfloat16)
    w2p = jnp.pad(w2, ((0, Hp - H), (0, Op - O))).astype(jnp.bfloat16)
    b1p = jnp.pad(b1.reshape(1, H), ((0, 0), (0, Hp - H))).astype(jnp.float32)
    b2p = jnp.pad(b2.reshape(1, O), ((0, 0), (0, Op - O))).astype(jnp.float32)
    return w1p, b1p, w2p, b2p


@partial(jax.jit, static_argnames=("out_features", "batch_tile"))
def neuralnet_forward(x, w1p, b1p, w2p, b2p, *, out_features, batch_tile=512):
    """Forward of the 2-layer MLP using pre-padded bf16 params from prepare_params.

    x: (B, I) f32. Returns (B, out_features) f32.
    """
    B, I = x.shape
    Ip, Hp = w1p.shape
    Op = w2p.shape[1]
    O = out_features

    # Batch tiling:
    #  * n_tiles = cdiv(B, batch_tile) avoids a whole wasted padding tile when B
    #    is just over a multiple of batch_tile.
    #  * force >=2 tiles for mid-size batches so the parallel axis can span both
    #    TensorCores on v7x.
    #  * TB always rounded to the sublane (8) so the block satisfies (8,128).
    n_tiles = pl.cdiv(B, batch_tile)
    if n_tiles == 1 and B >= 2 * MIN_SPLIT:
        n_tiles = 2
    TB = _round_up(pl.cdiv(B, n_tiles), SUBLANE)
    n_tiles = pl.cdiv(B, TB)
    Bp = n_tiles * TB
    grid = (n_tiles,)

    # Pad + cast x (bf16 halves streamed bytes); allow_input_fusion lets XLA fuse
    # this into the pallas_call operand instead of round-tripping xp via HBM.
    xp = jnp.pad(x, ((0, Bp - B), (0, Ip - I))).astype(jnp.bfloat16)

    out_p = pl.pallas_call(
        mlp_kernel,
        out_shape=jax.ShapeDtypeStruct((Bp, Op), jnp.float32),
        grid=grid,
        in_specs=[
            pl.BlockSpec((TB, Ip), lambda i: (i, 0)),   # batch tile streams through
            pl.BlockSpec((Ip, Hp), lambda i: (0, 0)),   # W1 resident across grid
            pl.BlockSpec((1, Hp), lambda i: (0, 0)),    # b1 resident
            pl.BlockSpec((Hp, Op), lambda i: (0, 0)),   # W2 resident
            pl.BlockSpec((1, Op), lambda i: (0, 0)),    # b2 resident
        ],
        out_specs=pl.BlockSpec((TB, Op), lambda i: (i, 0)),  # lane-dense store
        compiler_params=pltpu.CompilerParams(
            dimension_semantics=("parallel",),          # shard batch tiles across TCs
            allow_input_fusion=[True, False, False, False, False],
        ),
    )(xp, w1p, b1p, w2p, b2p)

    return out_p[:B, :O]


if __name__ == "__main__":
    # Shapes implied by the module: Linear(input, hidden) -> Sigmoid -> Linear(hidden, output)
    batch, input_size, hidden_size, output_size = 8, 32, 64, 16

    key = jax.random.PRNGKey(0)
    kx, kw1, kb1, kw2, kb2 = jax.random.split(key, 5)

    # PyTorch-style uniform init bounds; weights stored [in, out].
    bound1 = 1.0 / jnp.sqrt(input_size)
    bound2 = 1.0 / jnp.sqrt(hidden_size)
    w1 = jax.random.uniform(kw1, (input_size, hidden_size), jnp.float32, -bound1, bound1)
    b1 = jax.random.uniform(kb1, (hidden_size,), jnp.float32, -bound1, bound1)
    w2 = jax.random.uniform(kw2, (hidden_size, output_size), jnp.float32, -bound2, bound2)
    b2 = jax.random.uniform(kb2, (output_size,), jnp.float32, -bound2, bound2)

    x = jax.random.normal(kx, (batch, input_size), jnp.float32)

    # One-time param prep (pad + bf16 cast) hoisted out of the per-call path.
    params = prepare_params(w1, b1, w2, b2)
    params = jax.block_until_ready(params)

    out = neuralnet_forward(x, *params, out_features=output_size)
    out = jax.block_until_ready(out)

    # Pure-f32 JAX reference. The kernel uses bf16 MXU operands (f32 accumulation),
    # so tolerance is bf16-scale.
    ref = jax.nn.sigmoid(x @ w1 + b1[None, :]) @ w2 + b2[None, :]
    assert out.shape == (batch, output_size)
    assert jnp.allclose(out, ref, atol=2e-2, rtol=2e-2), float(jnp.max(jnp.abs(out - ref)))

    print("KERNEL_OK")
</pallas_src>

<mosaic_0001>
module attributes {stable_mosaic.version = 11 : i64} {
  func.func @mlp_kernel(%arg0: i32, %arg1: memref<8x128xbf16, #tpu.memory_space<vmem>>, %arg2: memref<128x128xbf16, #tpu.memory_space<vmem>>, %arg3: memref<1x128xf32, #tpu.memory_space<vmem>>, %arg4: memref<128x128xbf16, #tpu.memory_space<vmem>>, %arg5: memref<1x128xf32, #tpu.memory_space<vmem>>, %arg6: memref<8x128xf32, #tpu.memory_space<vmem>>) attributes {dimension_semantics = [#tpu.dimension_semantics<parallel>], iteration_bounds = array<i64: 1>, scalar_prefetch = 0 : i64, scratch_operands = 0 : i64, tpu.core_type = #tpu.core_type<tc>, window_params = [{transform_indices = @transform_0, window_bounds = array<i64: 8, 128>}, {pipeline_mode = #tpu.pipeline_mode<synchronous>, transform_indices = @transform_1, window_bounds = array<i64: 128, 128>}, {pipeline_mode = #tpu.pipeline_mode<synchronous>, transform_indices = @transform_2, window_bounds = array<i64: 1, 128>}, {pipeline_mode = #tpu.pipeline_mode<synchronous>, transform_indices = @transform_3, window_bounds = array<i64: 128, 128>}, {pipeline_mode = #tpu.pipeline_mode<synchronous>, transform_indices = @transform_4, window_bounds = array<i64: 1, 128>}, {transform_indices = @transform_5, window_bounds = array<i64: 8, 128>}]} {
    %c0 = arith.constant 0 : index
    %c0_0 = arith.constant 0 : index
    %0 = vector.load %arg1[%c0, %c0_0] : memref<8x128xbf16, #tpu.memory_space<vmem>>, vector<8x128xbf16>
    %c0_1 = arith.constant 0 : index
    %c0_2 = arith.constant 0 : index
    %1 = vector.load %arg2[%c0_1, %c0_2] : memref<128x128xbf16, #tpu.memory_space<vmem>>, vector<128x128xbf16>
    %cst = arith.constant dense<0.000000e+00> : vector<8x128xf32>
    %2 = tpu.matmul %0, %1, %cst {dimension_numbers = #tpu.dot_dimension_numbers<[1], [0], [0], [1], [0, 0, 1, 1], [], []>} : vector<8x128xbf16>, vector<128x128xbf16>, vector<8x128xf32> -> vector<8x128xf32>
    %c0_3 = arith.constant 0 : index
    %c0_4 = arith.constant 0 : index
    %3 = vector.load %arg3[%c0_3, %c0_4] : memref<1x128xf32, #tpu.memory_space<vmem>>, vector<1x128xf32>
    %4 = vector.broadcast %3 : vector<1x128xf32> to vector<8x128xf32>
    %5 = arith.addf %2, %4 : vector<8x128xf32>
    %cst_5 = arith.constant 5.000000e-01 : f32
    %6 = vector.broadcast %cst_5 : f32 to vector<8x128xf32>
    %7 = arith.mulf %6, %5 : vector<8x128xf32>
    %8 = math.tanh %7 : vector<8x128xf32>
    %cst_6 = arith.constant 1.000000e+00 : f32
    %9 = vector.broadcast %cst_6 : f32 to vector<8x128xf32>
    %10 = arith.addf %9, %8 : vector<8x128xf32>
    %cst_7 = arith.constant 5.000000e-01 : f32
    %11 = vector.broadcast %cst_7 : f32 to vector<8x128xf32>
    %12 = arith.mulf %11, %10 : vector<8x128xf32>
    %13 = arith.truncf %12 : vector<8x128xf32> to vector<8x128xbf16>
    %c0_8 = arith.constant 0 : index
    %c0_9 = arith.constant 0 : index
    %14 = vector.load %arg4[%c0_8, %c0_9] : memref<128x128xbf16, #tpu.memory_space<vmem>>, vector<128x128xbf16>
    %cst_10 = arith.constant dense<0.000000e+00> : vector<8x128xf32>
    %15 = tpu.matmul %13, %14, %cst_10 {dimension_numbers = #tpu.dot_dimension_numbers<[1], [0], [0], [1], [0, 0, 1, 1], [], []>} : vector<8x128xbf16>, vector<128x128xbf16>, vector<8x128xf32> -> vector<8x128xf32>
    %c0_11 = arith.constant 0 : index
    %c0_12 = arith.constant 0 : index
    %16 = vector.load %arg5[%c0_11, %c0_12] : memref<1x128xf32, #tpu.memory_space<vmem>>, vector<1x128xf32>
    %17 = vector.broadcast %16 : vector<1x128xf32> to vector<8x128xf32>
    %18 = arith.addf %15, %17 : vector<8x128xf32>
    %c0_13 = arith.constant 0 : index
    %c0_14 = arith.constant 0 : index
    %19 = vector.load %arg6[%c0_13, %c0_14] : memref<8x128xf32, #tpu.memory_space<vmem>>, vector<8x128xf32>
    tpu.vector_store %arg6[%c0_13, %c0_14], %18 {strides = array<i32>} : memref<8x128xf32, #tpu.memory_space<vmem>>, vector<8x128xf32>,
    return
  }
  func.func @transform_0(%arg0: i32) -> (i32, i32) {
    %c0_i32 = arith.constant 0 : i32
    %c0_i32_0 = arith.constant 0 : i32
    return %arg0, %c0_i32 : i32, i32
  }
  func.func @transform_1(%arg0: i32) -> (i32, i32) {
    %c0_i32 = arith.constant 0 : i32
    %c0_i32_0 = arith.constant 0 : i32
    %c0_i32_1 = arith.constant 0 : i32
    return %c0_i32, %c0_i32_0 : i32, i32
  }
  func.func @transform_2(%arg0: i32) -> (i32, i32) {
    %c0_i32 = arith.constant 0 : i32
    %c0_i32_0 = arith.constant 0 : i32
    %c0_i32_1 = arith.constant 0 : i32
    return %c0_i32, %c0_i32_0 : i32, i32
  }
  func.func @transform_3(%arg0: i32) -> (i32, i32) {
    %c0_i32 = arith.constant 0 : i32
    %c0_i32_0 = arith.constant 0 : i32
    %c0_i32_1 = arith.constant 0 : i32
    return %c0_i32, %c0_i32_0 : i32, i32
  }
  func.func @transform_4(%arg0: i32) -> (i32, i32) {
    %c0_i32 = arith.constant 0 : i32
    %c0_i32_0 = arith.constant 0 : i32
    %c0_i32_1 = arith.constant 0 : i32
    return %c0_i32, %c0_i32_0 : i32, i32
  }
  func.func @transform_5(%arg0: i32) -> (i32, i32) {
    %c0_i32 = arith.constant 0 : i32
    %c0_i32_0 = arith.constant 0 : i32
    return %arg0, %c0_i32 : i32, i32
  }
}

</mosaic_0001>

<bundles_post_ra>
// kernel: neuralnet_forward.2
= control target key start
LH: loop header
LB: loop body
LE: loop exit
PB: predicated region body
PF: predicated region fallthrough
CT: control target
= control target key end

     0   :  { %s552_s0 = inlined_call_operand.hbm [shape: bf16[128,128], index: 0, kind: input, shape index: {}]   ;;  %s553_s1 = inlined_call_operand.vmem [shape: f32[1,128], index: 1, kind: input, shape index: {}]   ;;  %s554_s2 = inlined_call_operand.hbm [shape: bf16[128,128], index: 2, kind: input, shape index: {}]   ;;  %s555_s3 = inlined_call_operand.vmem [shape: f32[1,128], index: 3, kind: input, shape index: {}]   ;;  %s556_s4 = inlined_call_operand.vmem [shape: bf16[8,32], index: 4, kind: input, shape index: {}]   ;;  %s557_s5 = inlined_call_operand.<no memory space> [shape: bf16[], index: 5, kind: input, shape index: {}]   ;;  %s558_s6 = inlined_call_operand.hbm [shape: f32[8,128], index: 6, kind: output, shape index: {}]  }
   0x1   :  { %v11_v0 = vstv %s557_s5 }
   0x2   :  { %v12_v1 = vunpack.i.l.bf16 %v11_v0 }
   0x3   :  { %16 = vsyncpa [#allocation8], 0 }
   0x4   :  { %17 = vsyncpa [#allocation11], 0 }
   0x5   :  { %18 = vsyncpa [#allocation9], 0  ;;  %s489_s23 = smov [#allocation7]  }
   0x6   :  { %s26_s24 = sshll.u32 %s489_s23, 4  ;;  %s27_s24 = int_to_ptr.vmem [resolvable:$true] %s26_s24 }
   0x7   :  { %s431_s25 = scalar_lea.vmem %s27_s24, 1024  ;;  %p436_p1 = scmp.lt.s32.totalorder %s27_s24, %s27_s24 }
   0x8   :  { %p432_p0 = scmp.ne.s32.totalorder %s27_s24, %s431_s25  ;;  %p437_p2 = scmp.lt.s32.totalorder %s431_s25, %s431_s25 }
   0xa   :  { %p438_p3 = por %p437_p2, %p436_p1 }
   0xc   :  { %p439_p4 = pnand %p438_p3, %p432_p0 }
   0xe   :  { %442 = shalt.err (!%p439_p4)
}
   0xf   :  { %s490_s26 = smov 64   ;;  %s491_s27 = smov 4  }
  0x10   :  { %32 = dma.hbm_to_vmem [thread:$0]  %s552_s0, 1024, %s27_s24, [#allocation8], %s490_s26, %s490_s26, %s491_s27  }
  0x11   :  { %s492_s5 = smov [#allocation10]  }
  0x12   :  { %s40_s30 = sshll.u32 %s492_s5, 4  ;;  %s41_s30 = int_to_ptr.vmem [resolvable:$true] %s40_s30 }
  0x13   :  { %s451_s7 = scalar_lea.vmem %s41_s30, 1024  ;;  %p456_p6 = scmp.lt.s32.totalorder %s41_s30, %s41_s30 }
  0x14   :  { %p452_p5 = scmp.ne.s32.totalorder %s41_s30, %s451_s7  ;;  %p457_p7 = scmp.lt.s32.totalorder %s451_s7, %s451_s7 }
  0x16   :  { %p458_p8 = por %p457_p7, %p456_p6 }
  0x18   :  { %p459_p9 = pnand %p458_p8, %p452_p5 }
  0x1a   :  { %462 = shalt.err (!%p459_p9)
}
  0x1b   :  { %46 = dma.hbm_to_vmem [thread:$0]  %s554_s2, 1024, %s41_s30, [#allocation11], %s490_s26, %s490_s26, %s491_s27  }
  0x1c   :  { %483 = dma.done.wait [#allocation8], 1024  }
  0x1d   :  { %484 = vsyncadd [#allocation8], 4294966272 }
  0x1e   :  { %485 = dma.done.wait [#allocation11], 1024  }
  0x1f   :  { %486 = vsyncadd [#allocation11], 4294966272  ;;  %v493_v2 = vmov 0.0   ;;  %vm494_vm0 = vmmov 0   ;;  %v67_v3 = vlaneseq  ;;  %v405_v4 = vld [vmem:[#allocation7 + $0x38] sm:$0xff]   ;;  %v406_v5 = vld [vmem:[#allocation7 + $0x30] sm:$0xff]  }
  0x20   :  { %358 = vmatprep.subr.bf16.mxu0 %v493_v2  ;;  %374 = vmatprep.mubr.msk.bf16.mxu0 %vm494_vm0, %v493_v2  ;;  %v407_v7 = vld [vmem:[#allocation7 + $0x28] sm:$0xff]   ;;  %v64_v8 = vld [vmem:[%s556_s4] sm:$0xf]  ;;  %v413_v10 = vld [vmem:[#allocation10 + $0x38] sm:$0xff]   ;;  %s495_s13 = smov [#allocation12]  }
  0x21   :  { %378 = vmatprep.subr.bf16.mxu1 %v493_v2  ;;  %394 = vmatprep.mubr.msk.bf16.mxu1 %vm494_vm0, %v493_v2  ;;  %v68_v6 = vand.u32 127, %v67_v3  ;;  %v65_v9 = vunpack.c.l.bf16 %v64_v8  ;;  %v408_v11 = vld [vmem:[#allocation7 + $0x20] sm:$0xff]   ;;  %v414_v12 = vld [vmem:[#allocation10 + $0x30] sm:$0xff]   ;;  %v409_v15 = vld [vmem:[#allocation7 + $0x18] sm:$0xff]   ;;  %s312_s14 = sshll.u32 %s495_s13, 4  ;;  %s313_s14 = int_to_ptr.vmem [resolvable:$true] %s312_s14 }
  0x22   :  { %359 = vmatpush3.bf16.msra.mxu0 %v405_v4  ;;  %379 = vmatpush3.bf16.msra.mxu1 %v413_v10  ;;  %v410_v16 = vld [vmem:[#allocation7 + $0x10] sm:$0xff]   ;;  %v411_v17 = vld [vmem:[#allocation7 + $0x8] sm:$0xff]   ;;  %v412_v18 = vld [vmem:[#allocation7] sm:$0xff]   ;;  %p468_p11 = scmp.lt.s32.totalorder %s313_s14, %s313_s14 }
  0x23   :  { %360 = vmatprep.subr.bf16.mxu0 %v493_v2  ;;  %vm70_vm1 = vcmp.lt.s32.totalorder %v68_v6, 32  ;;  %380 = vmatprep.subr.bf16.mxu1 %v493_v2  ;;  %v415_v20 = vld [vmem:[#allocation10 + $0x28] sm:$0xff]   ;;  %v416_v21 = vld [vmem:[#allocation10 + $0x20] sm:$0xff]   ;;  %v417_v22 = vld [vmem:[#allocation10 + $0x18] sm:$0xff]  }
  0x24   :  { %v71_v13 = vsel %vm70_vm1, %v65_v9, %v12_v1  ;;  %v418_v23 = vld [vmem:[#allocation10 + $0x10] sm:$0xff]   ;;  %v419_v24 = vld [vmem:[#allocation10 + $0x8] sm:$0xff]   ;;  %v420_v25 = vld [vmem:[#allocation10] sm:$0xff]  }
  0x25   :  { %v72_v14 = vpack.c.bf16 %v493_v2, %v71_v13  ;;  %v322_v26 = vld [vmem:[%s553_s1] ss:$0 sm:$0xff]  ;;  %s463_s1 = scalar_lea.vmem %s313_s14, 128 }
  0x26   :  { %361 = vmatpush3.bf16.msra.mxu0 %v406_v5  ;;  %381 = vmatpush3.bf16.msra.mxu1 %v414_v12  ;;  %v331_v37 = vld [vmem:[%s555_s3] ss:$0 sm:$0xff]  ;;  %p464_p10 = scmp.ne.s32.totalorder %s313_s14, %s463_s1  ;;  %p469_p12 = scmp.lt.s32.totalorder %s463_s1, %s463_s1 }
  0x27   :  { %362 = vmatprep.subr.bf16.mxu0 %v493_v2  ;;  %75 = vst [vmem:[#allocation13] sm:$0xf] %v72_v14  ;;  %382 = vmatprep.subr.bf16.mxu1 %v493_v2 }
  0x28   :  { %p470_p13 = por %p469_p12, %p468_p11 }
  0x2a   :  { %363 = vmatpush3.bf16.msra.mxu0 %v407_v7  ;;  %383 = vmatpush3.bf16.msra.mxu1 %v415_v20  ;;  %p471_p0 = pnand %p470_p13, %p464_p10 }
  0x2b   :  { %364 = vmatprep.subr.bf16.mxu0 %v493_v2  ;;  %384 = vmatprep.subr.bf16.mxu1 %v493_v2 }
  0x2e   :  { %365 = vmatpush3.bf16.msra.mxu0 %v408_v11  ;;  %v77_v19 = vld [vmem:[#allocation13] sm:$0xf]  ;;  %385 = vmatpush3.bf16.msra.mxu1 %v416_v21 }
  0x2f   :  { %366 = vmatprep.subr.bf16.mxu0 %v493_v2  ;;  %386 = vmatprep.subr.bf16.mxu1 %v493_v2 }
  0x32   :  { %367 = vmatpush3.bf16.msra.mxu0 %v409_v15  ;;  %387 = vmatpush3.bf16.msra.mxu1 %v417_v22 }
  0x33   :  { %368 = vmatprep.subr.bf16.mxu0 %v493_v2  ;;  %388 = vmatprep.subr.bf16.mxu1 %v493_v2 }
  0x36   :  { %369 = vmatpush3.bf16.msra.mxu0 %v410_v16  ;;  %389 = vmatpush3.bf16.msra.mxu1 %v418_v23 }
  0x37   :  { %370 = vmatprep.subr.bf16.mxu0 %v493_v2  ;;  %390 = vmatprep.subr.bf16.mxu1 %v493_v2 }
  0x3a   :  { %371 = vmatpush3.bf16.msra.mxu0 %v411_v17  ;;  %391 = vmatpush3.bf16.msra.mxu1 %v419_v24 }
  0x3b   :  { %372 = vmatprep.subr.bf16.mxu0 %v493_v2  ;;  %392 = vmatprep.subr.bf16.mxu1 %v493_v2 }
  0x3e   :  { %373 = vmatpush3.bf16.msra.mxu0 %v412_v18  ;;  %393 = vmatpush3.bf16.msra.mxu1 %v420_v25 }
  0x41   :  { %375 = vmatmul.mubr.bf16.vlgmr.msra.gmra.mxu0 %v77_v19 }
 0x101   :  { %v183_v27 = vpop.f32.mrf.mxu0 }
 0x102   :  { %v184_v28 = vadd.f32 %v322_v26, %v183_v27 }
 0x103   :  { %v376_v29 = vpop.f32.mrf.mxu0 }
 0x104   :  { %v189_v30 = vmul.f32 0.5, %v184_v28 }
 0x105   :  { %v186_v31 = vpop.f32.mrf.mxu0 }
 0x106   :  { %421 = vtanh.f32 %v189_v30 }
 0x107   :  { %v377_v32 = vpop.f32.mrf.mxu0 }
 0x113   :  { %v422_v33 = vpop.eup %421 }
 0x114   :  { %v191_v34 = vadd.f32 1.0, %v422_v33 }
 0x116   :  { %v192_v35 = vmul.f32 0.5, %v191_v34 }
 0x118   :  { %v193_v36 = vpack.c.bf16 %v192_v35, %v192_v35 }
 0x11a   :  { %395 = vmatmul.mubr.bf16.vlgmr.msra.gmra.mxu1 %v193_v36 }
 0x1da   :  { %v299_v38 = vpop.f32.mrf.mxu1 }
 0x1db   :  { %v300_v39 = vadd.f32 %v331_v37, %v299_v38 }
 0x1dc   :  { %v396_v40 = vpop.f32.mrf.mxu1 }
 0x1dd   :  { %305 = vst [vmem:[#allocation12] sm:$0xff] %v300_v39 }
 0x1de   :  { %v302_v41 = vpop.f32.mrf.mxu1 }
 0x1df   :  { %474 = shalt.err (!%p471_p0)
}
 0x1e0   :  { %315 = dma.vmem_to_hbm [thread:$0]  %s313_s14, 128, %s558_s6, [#allocation9]   ;;  %v397_v42 = vpop.f32.mrf.mxu1 }
 0x1e1   :  { %487 = dma.done.wait [#allocation9], 128  }
 0x1e2   :  { %488 = vsyncadd [#allocation9], 4294967168 }
 0x1e3   :  { %319 = vsyncpa [#allocation8], 1 }
 0x1e4   :  { %320 = vsyncpa [#allocation11], 1 }
 0x1e5   :  { %321 = vsyncpa [#allocation9], 1 }

</bundles_post_ra>
